<compile_context>
chip_gen: v7x
topology: tpu7x:2x2x1
jax: 0.10.0
libtpu: 0.0.40
codegen_flags: <defaults>
</compile_context>

<pallas_src>
import functools
import math

import jax
import jax.numpy as jnp
from jax import lax
from jax.experimental import pallas as pl
from jax.experimental.pallas import tpu as pltpu


def _fused_attention_kernel(x_ref, w_ref, b_ref, bo_ref, attn_ref, out_ref, *,
                            n_head, d_k, d_o, seq_len, batch_block, inv_scale):
    """One grid step handles `batch_block` batch rows.

    x_ref   : (batch_block*S, d_x)   flattened batch rows
    w_ref   : (d_x, 2*H*d_k + H*d_o) concatenated folded [Wq | Wk | Wvo] weights
    b_ref   : (1,   2*H*d_k + H*d_o) concatenated [bq | bk | 0] biases
    bo_ref  : (1, d_o)               collapsed output bias (fo_b + fv_b @ fo_w^T)
    attn_ref: (batch_block*S, H*S)   lane-packed attention weights
    out_ref : (batch_block*S, d_o)   final output
    """
    S = seq_len
    H = n_head
    qk = H * d_k

    # Single wide, lane-dense projection matmul for Q, K and the O-folded V.
    x = x_ref[...]                                                   # (bb*S, d_x)
    proj = jnp.dot(x, w_ref[...], preferred_element_type=jnp.float32) + b_ref[...]

    for b in range(batch_block):                      # static unroll (<= B)
        r0 = b * S
        q = proj[r0:r0 + S, :qk]                      # (S, H*d_k)
        k = proj[r0:r0 + S, qk:2 * qk]                # (S, H*d_k)
        vpr = proj[r0:r0 + S, 2 * qk:]                # (S, H*d_o)  (Wo already folded in)

        acc = None
        attn_heads = []
        for h in range(H):                            # static unroll; H is small
            qh = q[:, h * d_k:(h + 1) * d_k]          # (S, d_k) lane slices
            kh = k[:, h * d_k:(h + 1) * d_k]

            # scores = qh @ kh^T / sqrt(d_k) without materializing a transpose.
            s = lax.dot_general(qh, kh, (((1,), (1,)), ((), ())),
                                preferred_element_type=jnp.float32) * inv_scale
            # TODO(synk): attention mask (masked_fill with -inf) not implemented;
            #             this kernel is only valid for the mask=None path.
            m = jnp.max(s, axis=-1, keepdims=True)
            e = jnp.exp(s - m)
            attn_h = e / jnp.sum(e, axis=-1, keepdims=True)   # exact softmax
            attn_heads.append(attn_h)

            vh = vpr[:, h * d_o:(h + 1) * d_o]                # (S, d_o)
            c = jnp.dot(attn_h, vh, preferred_element_type=jnp.float32)
            acc = c if acc is None else acc + c

        # One lane-packed (S, H*S) store instead of H separate (S, S) masked stores.
        attn_ref[r0:r0 + S, :] = jnp.concatenate(attn_heads, axis=-1)
        out_ref[r0:r0 + S, :] = acc + bo_ref[...]


def _batch_block_for_device(B):
    """Whole batch per grid step on single-TC chips (v5e/v6e); B-parallel otherwise."""
    try:
        kind = jax.devices()[0].device_kind.lower()
    except Exception:
        return 1
    if any(t in kind for t in ("v5 lite", "v5e", "v5litepod", "v6 lite", "v6e")):
        return B          # single TensorCore: fewer, fatter grid steps win
    return 1              # v7x (2 TCs/chip) / unknown: keep batch axis parallel


def self_attention_forward(x, params, *, n_head, d_k, d_v, d_o):
    B, S, d_x = x.shape
    H = n_head
    inv_scale = 1.0 / math.sqrt(d_k)

    # --- host-side weight preparation (tiny, done once) ----------------------
    # Fold shared wq/wk/wv into the per-head projections, fold Wo into V, and
    # concatenate everything into one (d_x, 2*H*d_k + H*d_o) lane-dense weight.
    wq_all = jnp.dot(params["wq"], params["fq_w"].T)              # (d_x, H*d_k)
    wk_all = jnp.dot(params["wk"], params["fk_w"].T)              # (d_x, H*d_k)
    wv_all = jnp.dot(params["wv"], params["fv_w"].T)              # (d_x, H*d_v)
    wo_heads = params["fo_w"].T.reshape(H, d_v, d_o)              # (H, d_v, d_o)
    wvo_all = jnp.einsum("xhv,hvo->xho",
                         wv_all.reshape(d_x, H, d_v),
                         wo_heads).reshape(d_x, H * d_o)          # (d_x, H*d_o)
    w_all = jnp.concatenate([wq_all, wk_all, wvo_all], axis=1)    # (d_x, 2*H*d_k+H*d_o)
    b_all = jnp.concatenate(
        [params["fq_b"], params["fk_b"], jnp.zeros((H * d_o,), jnp.float32)]
    ).reshape(1, -1)
    # softmax rows sum to 1 => per-head V/O biases collapse into a single bias.
    bias_out = (params["fo_b"] + params["fv_b"] @ params["fo_w"].T).reshape(1, d_o)

    P = 2 * H * d_k + H * d_o
    bb = _batch_block_for_device(B)
    grid = (B // bb,)

    kernel = functools.partial(_fused_attention_kernel, n_head=H, d_k=d_k,
                               d_o=d_o, seq_len=S, batch_block=bb,
                               inv_scale=inv_scale)

    x_flat = x.reshape(B * S, d_x)      # free: contiguous

    attn_packed, out_flat = pl.pallas_call(
        kernel,
        grid=grid,
        in_specs=[
            pl.BlockSpec((bb * S, d_x), lambda i: (i, 0)),    # x rows for this step
            pl.BlockSpec((d_x, P), lambda i: (0, 0)),         # concatenated weights
            pl.BlockSpec((1, P), lambda i: (0, 0)),           # concatenated biases
            pl.BlockSpec((1, d_o), lambda i: (0, 0)),         # collapsed output bias
        ],
        out_specs=[
            pl.BlockSpec((bb * S, H * S), lambda i: (i, 0)),  # lane-packed attn
            pl.BlockSpec((bb * S, d_o), lambda i: (i, 0)),    # output
        ],
        out_shape=[
            jax.ShapeDtypeStruct((B * S, H * S), jnp.float32),
            jax.ShapeDtypeStruct((B * S, d_o), jnp.float32),
        ],
        compiler_params=pltpu.CompilerParams(
            dimension_semantics=("parallel",)),
    )(x_flat, w_all, b_all, bias_out)

    # Recover the PyTorch head-major (H*B, S, S) layout (tiny host-side transpose).
    attn = attn_packed.reshape(B, S, H, S).transpose(2, 0, 1, 3).reshape(H * B, S, S)
    out = out_flat.reshape(B, S, d_o)
    return attn, out


def init_params(key, *, n_head, d_k, d_v, d_x, d_o):
    """Deterministic init mimicking uniform(-1/sqrt(size(-1)), +1/sqrt(size(-1)))."""
    shapes = {
        "wq": (d_x, d_k), "wk": (d_x, d_k), "wv": (d_x, d_v),
        "fq_w": (n_head * d_k, d_k), "fq_b": (n_head * d_k,),
        "fk_w": (n_head * d_k, d_k), "fk_b": (n_head * d_k,),
        "fv_w": (n_head * d_v, d_v), "fv_b": (n_head * d_v,),
        "fo_w": (d_o, n_head * d_v), "fo_b": (d_o,),
    }
    params = {}
    keys = jax.random.split(key, len(shapes))
    for k_rng, (name, shp) in zip(keys, shapes.items()):
        stdv = 1.0 / math.sqrt(shp[-1])
        params[name] = jax.random.uniform(k_rng, shp, jnp.float32, -stdv, stdv)
    return params


def reference(x, p, *, n_head, d_k, d_v, d_o):
    """Pure-JAX port of the PyTorch SelfAttention forward (mask=None)."""
    B, S, _ = x.shape
    q = x @ p["wq"]; k = x @ p["wk"]; v = x @ p["wv"]
    qh = q @ p["fq_w"].T + p["fq_b"]
    kh = k @ p["fk_w"].T + p["fk_b"]
    vh = v @ p["fv_w"].T + p["fv_b"]
    qh = qh.reshape(B, S, n_head, d_k).transpose(2, 0, 1, 3).reshape(-1, S, d_k)
    kh = kh.reshape(B, S, n_head, d_k).transpose(2, 0, 1, 3).reshape(-1, S, d_k)
    vh = vh.reshape(B, S, n_head, d_v).transpose(2, 0, 1, 3).reshape(-1, S, d_v)
    u = jnp.einsum("bqd,bkd->bqk", qh, kh) / math.sqrt(d_k)
    attn = jax.nn.softmax(u, axis=-1)
    out = jnp.einsum("bqk,bkd->bqd", attn, vh)
    out = out.reshape(n_head, B, S, d_v).transpose(1, 2, 0, 3).reshape(B, S, -1)
    out = out @ p["fo_w"].T + p["fo_b"]
    return attn, out


if __name__ == "__main__":
    n_head, d_k, d_v, d_x, d_o = 4, 16, 16, 32, 32
    B, S = 2, 8

    key = jax.random.PRNGKey(0)
    k_x, k_p = jax.random.split(key)
    x = jax.random.normal(k_x, (B, S, d_x), dtype=jnp.float32)
    params = init_params(k_p, n_head=n_head, d_k=d_k, d_v=d_v, d_x=d_x, d_o=d_o)

    attn, out = self_attention_forward(
        x, params, n_head=n_head, d_k=d_k, d_v=d_v, d_o=d_o)
    jax.block_until_ready((attn, out))

    attn_ref, out_ref = reference(
        x, params, n_head=n_head, d_k=d_k, d_v=d_v, d_o=d_o)
    assert attn.shape == (n_head * B, S, S) and out.shape == (B, S, d_o)
    # Exact softmax + f32 everywhere; only the host-side weight folding changes
    # rounding (~1e-5), so a tight tolerance holds.
    assert jnp.allclose(attn, attn_ref, atol=1e-3, rtol=1e-3)
    assert jnp.allclose(out, out_ref, atol=1e-3, rtol=1e-3)

    print("KERNEL_OK")
</pallas_src>

<mosaic_0001>
module attributes {stable_mosaic.version = 11 : i64} {
  func.func @_fused_attention_kernel(%arg0: i32, %arg1: memref<8x32xf32, #tpu.memory_space<vmem>>, %arg2: memref<32x256xf32, #tpu.memory_space<vmem>>, %arg3: memref<1x256xf32, #tpu.memory_space<vmem>>, %arg4: memref<1x32xf32, #tpu.memory_space<vmem>>, %arg5: memref<8x32xf32, #tpu.memory_space<vmem>>, %arg6: memref<8x32xf32, #tpu.memory_space<vmem>>) attributes {dimension_semantics = [#tpu.dimension_semantics<parallel>], iteration_bounds = array<i64: 2>, scalar_prefetch = 0 : i64, scratch_operands = 0 : i64, tpu.core_type = #tpu.core_type<tc>, window_params = [{transform_indices = @transform_0, window_bounds = array<i64: 8, 32>}, {pipeline_mode = #tpu.pipeline_mode<synchronous>, transform_indices = @transform_1, window_bounds = array<i64: 32, 256>}, {pipeline_mode = #tpu.pipeline_mode<synchronous>, transform_indices = @transform_2, window_bounds = array<i64: 1, 256>}, {pipeline_mode = #tpu.pipeline_mode<synchronous>, transform_indices = @transform_3, window_bounds = array<i64: 1, 32>}, {transform_indices = @transform_4, window_bounds = array<i64: 8, 32>}, {transform_indices = @transform_5, window_bounds = array<i64: 8, 32>}]} {
    %c0 = arith.constant 0 : index
    %c0_0 = arith.constant 0 : index
    %0 = vector.load %arg1[%c0, %c0_0] : memref<8x32xf32, #tpu.memory_space<vmem>>, vector<8x32xf32>
    %c0_1 = arith.constant 0 : index
    %c0_2 = arith.constant 0 : index
    %1 = vector.load %arg2[%c0_1, %c0_2] : memref<32x256xf32, #tpu.memory_space<vmem>>, vector<32x256xf32>
    %cst = arith.constant dense<0.000000e+00> : vector<8x256xf32>
    %2 = tpu.matmul %0, %1, %cst {dimension_numbers = #tpu.dot_dimension_numbers<[1], [0], [0], [1], [0, 0, 1, 1], [], []>} : vector<8x32xf32>, vector<32x256xf32>, vector<8x256xf32> -> vector<8x256xf32>
    %c0_3 = arith.constant 0 : index
    %c0_4 = arith.constant 0 : index
    %3 = vector.load %arg3[%c0_3, %c0_4] : memref<1x256xf32, #tpu.memory_space<vmem>>, vector<1x256xf32>
    %4 = vector.broadcast %3 : vector<1x256xf32> to vector<8x256xf32>
    %5 = arith.addf %2, %4 : vector<8x256xf32>
    %6 = vector.extract_strided_slice %5 {offsets = [0, 0], sizes = [8, 64], strides = [1, 1]} : vector<8x256xf32> to vector<8x64xf32>
    %7 = vector.extract_strided_slice %5 {offsets = [0, 64], sizes = [8, 64], strides = [1, 1]} : vector<8x256xf32> to vector<8x64xf32>
    %8 = vector.extract_strided_slice %5 {offsets = [0, 128], sizes = [8, 128], strides = [1, 1]} : vector<8x256xf32> to vector<8x128xf32>
    %9 = vector.extract_strided_slice %6 {offsets = [0, 0], sizes = [8, 16], strides = [1, 1]} : vector<8x64xf32> to vector<8x16xf32>
    %10 = vector.extract_strided_slice %7 {offsets = [0, 0], sizes = [8, 16], strides = [1, 1]} : vector<8x64xf32> to vector<8x16xf32>
    %cst_5 = arith.constant dense<0.000000e+00> : vector<8x8xf32>
    %11 = tpu.matmul %9, %10, %cst_5 {dimension_numbers = #tpu.dot_dimension_numbers<[1], [1], [0], [0], [0, 0, 1, 0], [], []>} : vector<8x16xf32>, vector<8x16xf32>, vector<8x8xf32> -> vector<8x8xf32>
    %cst_6 = arith.constant 2.500000e-01 : f32
    %12 = vector.broadcast %cst_6 : f32 to vector<8x8xf32>
    %13 = arith.mulf %11, %12 : vector<8x8xf32>
    %cst_7 = arith.constant dense<0xFF800000> : vector<8xf32>
    %14 = vector.multi_reduction <maximumf>, %13, %cst_7 [1] : vector<8x8xf32> to vector<8xf32>
    %15 = vector.shape_cast %14 : vector<8xf32> to vector<8x1xf32>
    %16 = vector.broadcast %15 : vector<8x1xf32> to vector<8x8xf32>
    %17 = arith.subf %13, %16 : vector<8x8xf32>
    %18 = math.exp %17 : vector<8x8xf32>
    %cst_8 = arith.constant dense<0.000000e+00> : vector<8xf32>
    %19 = vector.multi_reduction <add>, %18, %cst_8 [1] : vector<8x8xf32> to vector<8xf32>
    %20 = vector.shape_cast %19 : vector<8xf32> to vector<8x1xf32>
    %21 = vector.broadcast %20 : vector<8x1xf32> to vector<8x8xf32>
    %22 = arith.divf %18, %21 : vector<8x8xf32>
    %23 = vector.extract_strided_slice %8 {offsets = [0, 0], sizes = [8, 32], strides = [1, 1]} : vector<8x128xf32> to vector<8x32xf32>
    %cst_9 = arith.constant dense<0.000000e+00> : vector<8x32xf32>
    %24 = tpu.matmul %22, %23, %cst_9 {dimension_numbers = #tpu.dot_dimension_numbers<[1], [0], [0], [1], [0, 0, 1, 1], [], []>} : vector<8x8xf32>, vector<8x32xf32>, vector<8x32xf32> -> vector<8x32xf32>
    %25 = vector.extract_strided_slice %6 {offsets = [0, 16], sizes = [8, 16], strides = [1, 1]} : vector<8x64xf32> to vector<8x16xf32>
    %26 = vector.extract_strided_slice %7 {offsets = [0, 16], sizes = [8, 16], strides = [1, 1]} : vector<8x64xf32> to vector<8x16xf32>
    %cst_10 = arith.constant dense<0.000000e+00> : vector<8x8xf32>
    %27 = tpu.matmul %25, %26, %cst_10 {dimension_numbers = #tpu.dot_dimension_numbers<[1], [1], [0], [0], [0, 0, 1, 0], [], []>} : vector<8x16xf32>, vector<8x16xf32>, vector<8x8xf32> -> vector<8x8xf32>
    %cst_11 = arith.constant 2.500000e-01 : f32
    %28 = vector.broadcast %cst_11 : f32 to vector<8x8xf32>
    %29 = arith.mulf %27, %28 : vector<8x8xf32>
    %cst_12 = arith.constant dense<0xFF800000> : vector<8xf32>
    %30 = vector.multi_reduction <maximumf>, %29, %cst_12 [1] : vector<8x8xf32> to vector<8xf32>
    %31 = vector.shape_cast %30 : vector<8xf32> to vector<8x1xf32>
    %32 = vector.broadcast %31 : vector<8x1xf32> to vector<8x8xf32>
    %33 = arith.subf %29, %32 : vector<8x8xf32>
    %34 = math.exp %33 : vector<8x8xf32>
    %cst_13 = arith.constant dense<0.000000e+00> : vector<8xf32>
    %35 = vector.multi_reduction <add>, %34, %cst_13 [1] : vector<8x8xf32> to vector<8xf32>
    %36 = vector.shape_cast %35 : vector<8xf32> to vector<8x1xf32>
    %37 = vector.broadcast %36 : vector<8x1xf32> to vector<8x8xf32>
    %38 = arith.divf %34, %37 : vector<8x8xf32>
    %39 = vector.extract_strided_slice %8 {offsets = [0, 32], sizes = [8, 32], strides = [1, 1]} : vector<8x128xf32> to vector<8x32xf32>
    %cst_14 = arith.constant dense<0.000000e+00> : vector<8x32xf32>
    %40 = tpu.matmul %38, %39, %cst_14 {dimension_numbers = #tpu.dot_dimension_numbers<[1], [0], [0], [1], [0, 0, 1, 1], [], []>} : vector<8x8xf32>, vector<8x32xf32>, vector<8x32xf32> -> vector<8x32xf32>
    %41 = arith.addf %24, %40 : vector<8x32xf32>
    %42 = vector.extract_strided_slice %6 {offsets = [0, 32], sizes = [8, 16], strides = [1, 1]} : vector<8x64xf32> to vector<8x16xf32>
    %43 = vector.extract_strided_slice %7 {offsets = [0, 32], sizes = [8, 16], strides = [1, 1]} : vector<8x64xf32> to vector<8x16xf32>
    %cst_15 = arith.constant dense<0.000000e+00> : vector<8x8xf32>
    %44 = tpu.matmul %42, %43, %cst_15 {dimension_numbers = #tpu.dot_dimension_numbers<[1], [1], [0], [0], [0, 0, 1, 0], [], []>} : vector<8x16xf32>, vector<8x16xf32>, vector<8x8xf32> -> vector<8x8xf32>
    %cst_16 = arith.constant 2.500000e-01 : f32
    %45 = vector.broadcast %cst_16 : f32 to vector<8x8xf32>
    %46 = arith.mulf %44, %45 : vector<8x8xf32>
    %cst_17 = arith.constant dense<0xFF800000> : vector<8xf32>
    %47 = vector.multi_reduction <maximumf>, %46, %cst_17 [1] : vector<8x8xf32> to vector<8xf32>
    %48 = vector.shape_cast %47 : vector<8xf32> to vector<8x1xf32>
    %49 = vector.broadcast %48 : vector<8x1xf32> to vector<8x8xf32>
    %50 = arith.subf %46, %49 : vector<8x8xf32>
    %51 = math.exp %50 : vector<8x8xf32>
    %cst_18 = arith.constant dense<0.000000e+00> : vector<8xf32>
    %52 = vector.multi_reduction <add>, %51, %cst_18 [1] : vector<8x8xf32> to vector<8xf32>
    %53 = vector.shape_cast %52 : vector<8xf32> to vector<8x1xf32>
    %54 = vector.broadcast %53 : vector<8x1xf32> to vector<8x8xf32>
    %55 = arith.divf %51, %54 : vector<8x8xf32>
    %56 = vector.extract_strided_slice %8 {offsets = [0, 64], sizes = [8, 32], strides = [1, 1]} : vector<8x128xf32> to vector<8x32xf32>
    %cst_19 = arith.constant dense<0.000000e+00> : vector<8x32xf32>
    %57 = tpu.matmul %55, %56, %cst_19 {dimension_numbers = #tpu.dot_dimension_numbers<[1], [0], [0], [1], [0, 0, 1, 1], [], []>} : vector<8x8xf32>, vector<8x32xf32>, vector<8x32xf32> -> vector<8x32xf32>
    %58 = arith.addf %41, %57 : vector<8x32xf32>
    %59 = vector.extract_strided_slice %6 {offsets = [0, 48], sizes = [8, 16], strides = [1, 1]} : vector<8x64xf32> to vector<8x16xf32>
    %60 = vector.extract_strided_slice %7 {offsets = [0, 48], sizes = [8, 16], strides = [1, 1]} : vector<8x64xf32> to vector<8x16xf32>
    %cst_20 = arith.constant dense<0.000000e+00> : vector<8x8xf32>
    %61 = tpu.matmul %59, %60, %cst_20 {dimension_numbers = #tpu.dot_dimension_numbers<[1], [1], [0], [0], [0, 0, 1, 0], [], []>} : vector<8x16xf32>, vector<8x16xf32>, vector<8x8xf32> -> vector<8x8xf32>
    %cst_21 = arith.constant 2.500000e-01 : f32
    %62 = vector.broadcast %cst_21 : f32 to vector<8x8xf32>
    %63 = arith.mulf %61, %62 : vector<8x8xf32>
    %cst_22 = arith.constant dense<0xFF800000> : vector<8xf32>
    %64 = vector.multi_reduction <maximumf>, %63, %cst_22 [1] : vector<8x8xf32> to vector<8xf32>
    %65 = vector.shape_cast %64 : vector<8xf32> to vector<8x1xf32>
    %66 = vector.broadcast %65 : vector<8x1xf32> to vector<8x8xf32>
    %67 = arith.subf %63, %66 : vector<8x8xf32>
    %68 = math.exp %67 : vector<8x8xf32>
    %cst_23 = arith.constant dense<0.000000e+00> : vector<8xf32>
    %69 = vector.multi_reduction <add>, %68, %cst_23 [1] : vector<8x8xf32> to vector<8xf32>
    %70 = vector.shape_cast %69 : vector<8xf32> to vector<8x1xf32>
    %71 = vector.broadcast %70 : vector<8x1xf32> to vector<8x8xf32>
    %72 = arith.divf %68, %71 : vector<8x8xf32>
    %73 = vector.extract_strided_slice %8 {offsets = [0, 96], sizes = [8, 32], strides = [1, 1]} : vector<8x128xf32> to vector<8x32xf32>
    %cst_24 = arith.constant dense<0.000000e+00> : vector<8x32xf32>
    %74 = tpu.matmul %72, %73, %cst_24 {dimension_numbers = #tpu.dot_dimension_numbers<[1], [0], [0], [1], [0, 0, 1, 1], [], []>} : vector<8x8xf32>, vector<8x32xf32>, vector<8x32xf32> -> vector<8x32xf32>
    %75 = arith.addf %58, %74 : vector<8x32xf32>
    %76 = tpu.concatenate %22, %38, %55, %72 in 1 : vector<8x8xf32>, vector<8x8xf32>, vector<8x8xf32>, vector<8x8xf32> -> vector<8x32xf32>
    %c0_25 = arith.constant 0 : index
    %c0_26 = arith.constant 0 : index
    %77 = vector.load %arg5[%c0_25, %c0_26] : memref<8x32xf32, #tpu.memory_space<vmem>>, vector<8x32xf32>
    tpu.vector_store %arg5[%c0_25, %c0_26], %76 {strides = array<i32>} : memref<8x32xf32, #tpu.memory_space<vmem>>, vector<8x32xf32>,
    %c0_27 = arith.constant 0 : index
    %c0_28 = arith.constant 0 : index
    %78 = vector.load %arg4[%c0_27, %c0_28] : memref<1x32xf32, #tpu.memory_space<vmem>>, vector<1x32xf32>
    %79 = vector.broadcast %78 : vector<1x32xf32> to vector<8x32xf32>
    %80 = arith.addf %75, %79 : vector<8x32xf32>
    %c0_29 = arith.constant 0 : index
    %c0_30 = arith.constant 0 : index
    %81 = vector.load %arg6[%c0_29, %c0_30] : memref<8x32xf32, #tpu.memory_space<vmem>>, vector<8x32xf32>
    tpu.vector_store %arg6[%c0_29, %c0_30], %80 {strides = array<i32>} : memref<8x32xf32, #tpu.memory_space<vmem>>, vector<8x32xf32>,
    return
  }
  func.func @transform_0(%arg0: i32) -> (i32, i32) {
    %c0_i32 = arith.constant 0 : i32
    %c0_i32_0 = arith.constant 0 : i32
    return %arg0, %c0_i32 : i32, i32
  }
  func.func @transform_1(%arg0: i32) -> (i32, i32) {
    %c0_i32 = arith.constant 0 : i32
    %c0_i32_0 = arith.constant 0 : i32
    %c0_i32_1 = arith.constant 0 : i32
    return %c0_i32, %c0_i32_0 : i32, i32
  }
  func.func @transform_2(%arg0: i32) -> (i32, i32) {
    %c0_i32 = arith.constant 0 : i32
    %c0_i32_0 = arith.constant 0 : i32
    %c0_i32_1 = arith.constant 0 : i32
    return %c0_i32, %c0_i32_0 : i32, i32
  }
  func.func @transform_3(%arg0: i32) -> (i32, i32) {
    %c0_i32 = arith.constant 0 : i32
    %c0_i32_0 = arith.constant 0 : i32
    %c0_i32_1 = arith.constant 0 : i32
    return %c0_i32, %c0_i32_0 : i32, i32
  }
  func.func @transform_4(%arg0: i32) -> (i32, i32) {
    %c0_i32 = arith.constant 0 : i32
    %c0_i32_0 = arith.constant 0 : i32
    return %arg0, %c0_i32 : i32, i32
  }
  func.func @transform_5(%arg0: i32) -> (i32, i32) {
    %c0_i32 = arith.constant 0 : i32
    %c0_i32_0 = arith.constant 0 : i32
    return %arg0, %c0_i32 : i32, i32
  }
}

</mosaic_0001>

<bundles_post_ra>
// kernel: tpu_custom_call.1
= control target key start
LH: loop header
LB: loop body
LE: loop exit
PB: predicated region body
PF: predicated region fallthrough
CT: control target
= control target key end

     0   :  { %11 = vsyncpa [#allocation3], 0  ;;  %s1891_s0 = inlined_call_operand.hbm [shape: f32[16,32], index: 0, kind: input, shape index: {}]   ;;  %s1892_s1 = inlined_call_operand.hbm [shape: f32[32,256], index: 1, kind: input, shape index: {}]   ;;  %s1893_s2 = inlined_call_operand.vmem [shape: f32[1,256], index: 2, kind: input, shape index: {}]   ;;  %s1894_s3 = inlined_call_operand.vmem [shape: f32[1,32], index: 3, kind: input, shape index: {}]   ;;  %s1895_s4 = inlined_call_operand.hbm [shape: f32[16,32], index: 4, kind: output, shape index: {0}]   ;;  %s1896_s5 = inlined_call_operand.hbm [shape: f32[16,32], index: 5, kind: output, shape index: {1}]  }
   0x1   :  { %13 = vsyncpa [#allocation3 + $0x1], 0 }
   0x2   :  { %14 = vsyncpa [#allocation6], 0 }
   0x3   :  { %15 = vsyncpa [#allocation4], 0 }
   0x4   :  { %17 = vsyncpa [#allocation4 + $0x1], 0 }
   0x5   :  { %18 = vsyncpa [#allocation9], 0 }
   0x6   :  { %20 = vsyncpa [#allocation9 + $0x1], 0  ;;  %s1589_s18 = smov 0   ;;  %s1591_s19 = smov 0  }
   0x7   :  { %s1593_s20 = smov 0   ;;  %s1595_s21 = smov 0  }
   0x8 LB: > { %s1610_s22 = sadd.s32 4294967295, %s1540_s21   ;;  %s1194_s23 = sadd.s32 4294967294, %s1540_s21   ;;  %s1540_s21 = sphi %s1595_s21, %s1916_s21   ;;  %s1536_s20 = sphi %s1593_s20, %s1915_s20   ;;  %s1532_s19 = sphi %s1591_s19, %s1914_s19   ;;  %s1528_s18 = sphi %s1589_s18, %s1913_s18  }
   0x9   : > { %p46_p0 = scmp.ne.s32.totalorder %s1532_s19, %s1528_s18  ;;  %p1897_p1 = scmp.eq.s32.totalorder %s1610_s22, 0 }
   0xa   : > { %p139_p3 = scmp.eq.s32.totalorder %s1194_s23, 1  ;;  %p1195_p5 = scmp.ge.s32.totalorder %s1540_s21, 1 }
   0xb   : > { %p1619_p4 = por %p1897_p1, %p46_p0  ;;  %p172_p7 = scmp.lt.s32.totalorder %s1540_s21, 3 }
   0xc   : > { %p1624_p6 = por %p139_p3, %p46_p0  ;;  %s1542_s27 = smov [#allocation5]  }
   0xd   : > { %s1900_s24 = scalar_select %p1619_p4, 1, 0 }
   0xe   : > { %s1901_s25 = scalar_select %p1624_p6, 1, 0 }
   0xf   : > { %p1629_p8 = pnand %p1195_p5, %p172_p7  ;;  %s184_s28 = sshll.u32 %s1542_s27, 4  ;;  %s1633_s28 = int_to_ptr.vmem [resolvable:$true] %s184_s28 }
  0x10   : > { %s1645_s30 = sadd.s32 1, %s1540_s21   ;;  %s33_s6 = sadd.s32 1, %s1536_s20 }
  0x11   : > { %s1902_s26 = scalar_select %p1629_p8, 1, 0 }
  0x12   : > { %p1299_p9 = pneg %p1629_p8  ;;  %s30_s7 = ssub.s32 %s1540_s21, %s1645_s30 }
  0x13   : > { %s1380_s10 = scalar_lea.hbm %s1892_s1, 1024 }
  0x14   : > { %p1640_p11 = pnand %p1299_p9, %p1897_p1  ;;  %p1381_p12 = scmp.ne.s32.totalorder %s1892_s1, %s1380_s10 }
  0x15   : > { %p1387_p5 = scmp.lt.u32.totalorder %s1380_s10, %s1892_s1 }
  0x16   : > { %p1382_p13 = pneg %p1640_p11 }
  0x18   : > { %p1383_p0 = pnand %p1382_p13, %p1381_p12 }
  0x1a   : > { %p1384_p3 = pneg %p1383_p0 }
  0x1c   : > { %p1389_p7 = pnand %p1387_p5, %p1384_p3 }
  0x1e   : > { %1392 = shalt.err (!%p1389_p7)
}
  0x1f   : > { %s1393_s15 = scalar_lea.vmem %s1633_s28, 1024  ;;  %p1401_p2 = scmp.lt.s32.totalorder %s1633_s28, %s1633_s28 }
  0x20   : > { %p1394_p9 = scmp.ne.s32.totalorder %s1633_s28, %s1393_s15  ;;  %p1402_p6 = scmp.lt.s32.totalorder %s1393_s15, %s1393_s15 }
  0x22   : > { %p1396_p10 = pnand %p1394_p9, %p1382_p13  ;;  %p1403_p4 = por %p1402_p6, %p1401_p2 }
  0x24   : > { %p1397_p1 = pneg %p1396_p10 }
  0x26   : > { %p1404_p8 = pnand %p1403_p4, %p1397_p1 }
  0x28   : > { %1407 = shalt.err (!%p1404_p8)
}
  0x29   : > { %s1543_s16 = smov 256   ;;  %s1544_s17 = smov 16  }
  0x2a   : > { %1302 = dma.hbm_to_vmem [thread:$0]  (!%p1640_p11), %s1892_s1, 1024, %s1633_s28, [#allocation6], %s1543_s16, %s1543_s16, %s1544_s17  }
  0x2b   : > { %p31_p2 = scmp.eq.s32.totalorder %s30_s7, 0  ;;  %p40_p1 = scmp.ne.s32.totalorder %s1536_s20, %s1532_s19 }
  0x2c   : > { %p41_p4 = scmp.eq.s32.totalorder %s1540_s21, 0  ;;  %p1315_p6 = scmp.lt.s32.totalorder %s1540_s21, 2 }
  0x2d   : > { %s1676_s8 = scalar_select %p31_p2, %s1536_s20, %s33_s6  }
  0x2e   : > { %p42_p8 = por %p41_p4, %p40_p1  ;;  %p1904_p10 = scmp.eq.s32.totalorder %s1610_s22, 1 }
  0x2f   : > { %s204_s10 = sand.u32 1, %s1536_s20   ;;  %s1199_s11 = sshll.u32 %s1540_s21, 7 }
  0x30   : > { %p1680_p12 = por %p1904_p10, %p40_p1  ;;  %s1198_s12 = sshll.u32 %s204_s10, 3 }
  0x31   : > { %s1689_s14 = scalar_lea.hbm %s1891_s0, %s1199_s11  ;;  %s208_s28 = scalar_lea.vmem [#allocation2], %s1198_s12 }
  0x32   : > { %s215_s6 = sshll.u32 %s208_s28, 4  ;;  %p1691_p11 = pnand %p1315_p6, %p42_p8  ;;  %s1695_s6 = int_to_ptr.vmem [resolvable:$true] %s215_s6 }
  0x33   : > { %s205_s15 = scalar_lea.sflag [#allocation3], %s204_s10  ;;  %s1408_s16 = scalar_lea.hbm %s1689_s14, 128 }
  0x34   : > { %p1409_p13 = scmp.ne.s32.totalorder %s1689_s14, %s1408_s16  ;;  %p1410_p0 = pneg %p1691_p11 }
  0x35   : > { %s1413_s27 = scalar_lea.hbm %s1891_s0, 256  ;;  %p1414_p7 = scmp.lt.u32.totalorder %s1689_s14, %s1891_s0 }
  0x36   : > { %p1411_p3 = pnand %p1410_p0, %p1409_p13  ;;  %p1415_p9 = scmp.lt.u32.totalorder %s1413_s27, %s1408_s16 }
  0x37   : > { %p1417_p1 = scmp.lt.u32.totalorder %s1408_s16, %s1689_s14 }
  0x38   : > { %p1412_p5 = pneg %p1411_p3  ;;  %p1416_p2 = por %p1415_p9, %p1414_p7 }
  0x3a   : > { %p1418_p4 = por %p1417_p1, %p1416_p2 }
  0x3c   : > { %p1419_p6 = pnand %p1418_p4, %p1412_p5 }
  0x3e   : > { %1422 = shalt.err (!%p1419_p6)
}
  0x3f   : > { %s1423_s10 = scalar_lea.vmem %s1695_s6, 128  ;;  %s1545_s29 = smov [#allocation2]  }
  0x40   : > { %p1424_p8 = scmp.ne.s32.totalorder %s1695_s6, %s1423_s10  ;;  %s1428_s13 = sshll.u32 %s1545_s29, 4  ;;  %s1429_s13 = int_to_ptr.vmem [resolvable:$false] %s1428_s13 }
  0x41   : > { %s1430_s28 = scalar_lea.vmem %s1429_s13, 256  ;;  %p1431_p3 = scmp.lt.s32.totalorder %s1695_s6, %s1429_s13 }
  0x42   : > { %p1426_p10 = pnand %p1424_p8, %p1410_p0  ;;  %p1432_p7 = scmp.lt.s32.totalorder %s1430_s28, %s1423_s10 }
  0x44   : > { %p1427_p13 = pneg %p1426_p10  ;;  %p1433_p9 = por %p1432_p7, %p1431_p3 }
  0x46   : > { %p1434_p2 = pnand %p1433_p9, %p1427_p13 }
  0x48   : > { %1437 = shalt.err (!%p1434_p2)
}
  0x49   : > { %1306 = dma.hbm_to_vmem [thread:$0]  (!%p1691_p11), %s1689_s14, 128, %s1695_s6, %s205_s15  }
  0x4a   : > { %p1907_p5 = scmp.ne.s32.totalorder %s1902_s26, 0 }
  0x4b   : > { %s1725_s16 = sand.u32 (!%p1907_p5), 1, %s1532_s19   ;;  %p1908_p0 = scmp.ne.s32.totalorder (!%p1907_p5), %s1900_s24, 0 }
  0x4c   : > { %224 = sbr.rel (%p1907_p5) target bundleno = 1728 (0x6c0), region = 36  ;;  %s1728_s17 = sshll.u32 (!%p1907_p5), %s1725_s16, 3 }
  0x4d   : > { %s227_s23 = scalar_lea.sflag (!%p1907_p5), [#allocation3], %s1725_s16  ;;  %s230_s27 = scalar_lea.vmem (!%p1907_p5), [#allocation2], %s1728_s17 }
  0x53   : > { %1511 = dma.done.wait (%p1908_p0), %s227_s23, 128  }
  0x54   : > { %1513 = vsyncadd (%p1908_p0), %s227_s23, 4294967168  ;;  %p1909_p11 = scmp.eq.s32.totalorder %s1610_s22, 0 }
  0x56   : > { %1515 = dma.done.wait (%p1909_p11), [#allocation6], 1024   ;;  %p1910_p1 = pmov %p1909_p11 }
  0x57   : > { %v1546_v0 = vmov 0.0   ;;  %v268_v1 = vld [vmem:[#allocation5 + $0x8] sm:$0xff]  ;;  %v270_v2 = vld [vmem:[#allocation5 + $0x18] sm:$0xff]  ;;  %v267_v3 = vld [vmem:[#allocation5] sm:$0xff]  ;;  %vm287_vm0 = vcmask 261120   ;;  %v277_v14 = vlaneseq  ;;  %vm1547_vm1 = vmmov 0  }
  0x58   : > { %1517 = vsyncadd (%p1910_p1), [#allocation6], 4294966272  ;;  %355 = vmatprep.mubr.f32.mxu0 %v1546_v0  ;;  %1241 = vmatprep.subr.mxu1 %v1546_v0  ;;  %v1281_v4 = vpack.c.bf16 %v270_v2, %v268_v1  ;;  %v269_v5 = vld [vmem:[#allocation5 + $0x10] sm:$0xff]  ;;  %v272_v6 = vld [vmem:[#allocation5 + $0x28] sm:$0xff]  ;;  %s1548_s14 = smov 112   ;;  %s1549_s6 = smov 64  }
  0x59   : > { %v274_v7 = vld [vmem:[#allocation5 + $0x38] sm:$0xff]  ;;  %v1283_v8 = vpack.c.bf16 %v269_v5, %v267_v3  ;;  %v271_v10 = vld [vmem:[#allocation5 + $0x20] sm:$0xff]  ;;  %v273_v11 = vld [vmem:[#allocation5 + $0x30] sm:$0xff]  ;;  %v278_v15 = vshrl.u32 %v277_v14, 7  ;;  %1243 = vmatprep.mubr.msk.f32.mxu1 %vm1547_vm1, %v1546_v0  ;;  %s1550_s7 = smov 48   ;;  %vm365_vm2 = vcmask 130048  }
  0x5a   : > { %v1285_v9 = vpack.c.bf16 %v274_v7, %v272_v6  ;;  %1282 = vmatprep.subr.bf16.mxu0 %v1281_v4  ;;  %v1287_v12 = vpack.c.bf16 %v273_v11, %v271_v10  ;;  %v266_v13 = vld [vmem:[%s230_s27] sm:$0xff]  ;;  %vm441_vm3 = vcmask 64512   ;;  %s1551_s15 = smov 32   ;;  %s1552_s11 = smov 96   ;;  %vm1038_vm4 = vcmask 195584  }
  0x5b   : > { %1284 = vmatpush1.bf16.msra.mxu0 %v1283_v8  ;;  %v279_v16 = vsub.s32 0, %v278_v15  ;;  %v275_v17 = vld [vmem:[%s1893_s2] sm:$0x3]  ;;  %v283_v22 = vsub.s32 1, %v278_v15  ;;  %s1553_s12 = smov 80   ;;  %s1554_s10 = smov 16  }
  0x5c   : > { %1286 = vmatprep.subr.bf16.mxu0 %v1285_v9  ;;  %s1555_s29 = smov 8   ;;  %s1556_s13 = smov 24  }
  0x5d   : > { %v280_v18 = vrot.slane %v275_v17, %v279_v16  ;;  %v284_v24 = vrot.slane %v275_v17, %v283_v22  ;;  %s1221_s28 = sshll.u32 %s1610_s22, 7  ;;  %s258_s23 = scalar_lea.vmem [#allocation7], %s1728_s17 }
  0x5e   : > { %s1069_s27 = sshll.u32 %s258_s23, 4  ;;  %s1812_s27 = int_to_ptr.vmem [resolvable:$true] %s1069_s27 }
  0x5f   : > { %1288 = vmatpush1.bf16.msra.mxu0 %v1287_v12 }
  0x60   : > { %1251 = vmatprep.subr.mxu0 %v1546_v0 }
  0x62   : > { %1205 = vmatmul.mubr.msk.f32.vlgmr.msra.gmra.mrb[0].mxu0 %vm287_vm0, %v266_v13 }
  0x63   : > { %1253 = vmatprep.mubr.msk.f32.mxu0 %vm1547_vm1, %v1546_v0 }
 0x135   : > { %v357_v19 = vpop.f32.mrb[0].mxu0 }
 0x136   : > { %v358_v20 = vadd.f32 %v357_v19, %v280_v18  ;;  %v359_v21 = vpop.f32.mrb[1].mxu0 }
 0x137   : > { %v1759_v26 = vadd.f32 %v359_v21, %v284_v24 }
 0x138   : > { %453 = vrot.lane.b32.xlu1 %v358_v20, %s1548_s14  ;;  %363 = vrot.lane.b32.xlu0 %v358_v20, %s1549_s6  ;;  %s1810_s14 = scalar_lea.hbm %s1895_s4, %s1221_s28 }
 0x13c   : > { %455 = vrot.lane.b32.xlu0 %v358_v20, %s1550_s7  ;;  %s1438_s7 = scalar_lea.vmem %s1812_s27, 128 }
 0x13d   : > { %p1439_p4 = scmp.ne.s32.totalorder %s1812_s27, %s1438_s7 }
 0x13f   : > { %p1440_p6 = pnand %p1439_p4, %p1680_p12 }
 0x141   : > { %p1441_p8 = pneg %p1440_p6 }
 0x1aa   : > { %v364_v23 = vpop.permute.xlu0 %363  ;;  %v454_v27 = vpop.permute.xlu1 %453 }
 0x1ab   : > { %1242 = vmatpush3.xpose.msk.msra.mxu1 %vm365_vm2, %v364_v23 }
 0x1ac   : > { %1246 = vmatprep.subr.mxu1 %v1546_v0 }
 0x1ae   : > { %1244 = vmatmul.mubr.msk.f32.vlgmr.msra.gmra.mrb[0].mxu1 %vm365_vm2, %v358_v20  ;;  %v456_v25 = vpop.permute.xlu0 %455 }
 0x1af   : > { %1247 = vmatpush3.xpose.msk.msra.mxu1 %vm365_vm2, %v456_v25  ;;  %1248 = vmatprep.mubr.msk.f32.mxu1 %vm1547_vm1, %v1546_v0 }
 0x1b0   : > { %1256 = vmatprep.subr.mxu1 %v1546_v0 }
 0x1b2   : > { %1249 = vmatmul.mubr.msk.f32.vlgmr.msra.gmra.mrb[2].mxu1 %vm365_vm2, %v454_v27 }
 0x1b3   : > { %1257 = vmatpush3.msra.mxu1 %v1759_v26  ;;  %1258 = vmatprep.mubr.msk.f32.mxu1 %vm1547_vm1, %v1546_v0 }
 0x1b4   : > { %1266 = vmatprep.subr.mxu1 %v1546_v0 }
 0x281   : > { %v436_v28 = vpop.f32.mrb[0].mxu1 }
 0x282   : > { %v1245_v29 = vpop.f32.mrb[1].mxu1  ;;  %v440_v39 = vmul.f32 0.25, %v436_v28 }
 0x284   : > { %v442_v40 = vsel %vm441_vm3, %v440_v39, -inf }
 0x285   : > { %v527_v30 = vpop.f32.mrb[2].mxu1 }
 0x286   : > { %v531_v31 = vmul.f32 0.25, %v527_v30  ;;  %v1250_v32 = vpop.f32.mrb[3].mxu1 }
 0x288   : > { %v532_v33 = vsel %vm441_vm3, %v531_v31, -inf }
 0x289   : > { %533 = vmax.xlane.f32.xlu1 %v532_v33 }
 0x29a   : > { %695 = vrot.lane.b32.xlu1 %v358_v20, %s1551_s15 }
 0x29e   : > { %693 = vrot.lane.b32.xlu1 %v358_v20, %s1552_s11 }
 0x2a2   : > { %860 = vrot.lane.b32.xlu1 %v358_v20, %s1553_s12 }
 0x316   : > { %v534_v34 = vpop.xlane.xlu1 %533 }
 0x317   : > { %v535_v35 = vsub.f32 %v531_v31, %v534_v34 }
 0x319   : > { %v536_v36 = vmul.f32 1.442695, %v535_v35 }
 0x31a   : > { %v696_v43 = vpop.permute.xlu1 %695 }
 0x31b   : > { %1364 = vpow2.f32 %v536_v36 }
 0x31e   : > { %v694_v46 = vpop.permute.xlu1 %693 }
 0x322   : > { %v861_v48 = vpop.permute.xlu1 %860 }
 0x325   : > { %v1365_v37 = vpop.eup %1364 }
 0x326   : > { %v538_v38 = vsel %vm441_vm3, %v1365_v37, 0.0 }
 0x327   : > { %539 = vadd.xlane.f32.xlu0 %v538_v38 }
 0x33d   : > { %544 = vrot.lane.b32.xlu0 %v1759_v26, %s1552_s11 }
 0x341   : > { %862 = vrot.lane.b32.xlu0 %v358_v20, %s1554_s10 }
 0x360   : > { %443 = vmax.xlane.f32.xlu0 %v442_v40 }
 0x3b4   : > { %v540_v41 = vpop.xlane.xlu0 %539 }
 0x3b5   : > { %1366 = vrcp.f32 %v540_v41 }
 0x3b8   : > { %v545_v42 = vpop.permute.xlu0 %544 }
 0x3b9   : > { %1252 = vmatpush3.msra.mxu0 %v545_v42 }
 0x3ba   : > { %1261 = vmatprep.subr.mxu0 %v1546_v0 }
 0x3bc   : > { %v863_v47 = vpop.permute.xlu0 %862 }
 0x3bf   : > { %v1367_v44 = vpop.eup %1366 }
 0x3c0   : > { %v542_v45 = vmul.f32 %v1367_v44, %v1365_v37 }
 0x3c2   : > { %1254 = vmatmul.mubr.msk.f32.vlgmr.msra.gmra.mrb[2].mxu0 %vm441_vm3, %v542_v45 }
 0x3c3   : > { %1262 = vmatpush3.xpose.msk.msra.mxu0 %vm365_vm2, %v696_v43  ;;  %1263 = vmatprep.mubr.msk.f32.mxu0 %vm1547_vm1, %v1546_v0 }
 0x3c4   : > { %1271 = vmatprep.subr.mxu0 %v1546_v0 }
 0x3c6   : > { %1264 = vmatmul.mubr.msk.f32.vlgmr.msra.gmra.mrb[4].mxu0 %vm365_vm2, %v694_v46 }
 0x3c7   : > { %1272 = vmatpush3.xpose.msk.msra.mxu0 %vm365_vm2, %v863_v47  ;;  %1273 = vmatprep.mubr.msk.f32.mxu0 %vm1547_vm1, %v1546_v0 }
 0x3ca   : > { %1274 = vmatmul.mubr.msk.f32.vlgmr.msra.gmra.mrb[6].mxu0 %vm365_vm2, %v861_v48 }
 0x3ed   : > { %v444_v49 = vpop.xlane.xlu0 %443 }
 0x3ee   : > { %v445_v50 = vsub.f32 %v440_v39, %v444_v49 }
 0x3f0   : > { %v446_v51 = vmul.f32 1.442695, %v445_v50 }
 0x3f2   : > { %1368 = vpow2.f32 %v446_v51 }
 0x3fc   : > { %v1369_v62 = vpop.eup %1368 }
 0x3fd   : > { %v448_v63 = vsel %vm441_vm3, %v1369_v62, 0.0 }
 0x495   : > { %v616_v52 = vpop.f32.mrb[2].mxu0 }
 0x496   : > { %v1255_v53 = vpop.f32.mrb[3].mxu0 }
 0x499   : > { %v767_v54 = vpop.f32.mrb[4].mxu0 }
 0x49a   : > { %v771_v55 = vmul.f32 0.25, %v767_v54  ;;  %v1265_v56 = vpop.f32.mrb[5].mxu0 }
 0x49c   : > { %v772_v57 = vsel %vm441_vm3, %v771_v55, -inf }
 0x49d   : > { %773 = vmax.xlane.f32.xlu1 %v772_v57  ;;  %v934_v58 = vpop.f32.mrb[6].mxu0 }
 0x49e   : > { %v938_v59 = vmul.f32 0.25, %v934_v58  ;;  %v1275_v60 = vpop.f32.mrb[7].mxu0 }
 0x4a0   : > { %v939_v61 = vsel %vm441_vm3, %v938_v59, -inf }
 0x4a1   : > { %940 = vmax.xlane.f32.xlu0 %v939_v61 }
 0x4a5   : > { %449 = vadd.xlane.f32.xlu0 %v448_v63 }
 0x52a   : > { %v774_v1 = vpop.xlane.xlu1 %773 }
 0x52b   : > { %v775_v2 = vsub.f32 %v771_v55, %v774_v1 }
 0x52d   : > { %v776_v3 = vmul.f32 1.442695, %v775_v2 }
 0x52e   : > { %v941_v4 = vpop.xlane.xlu0 %940 }
 0x52f   : > { %1370 = vpow2.f32 %v776_v3  ;;  %v942_v5 = vsub.f32 %v938_v59, %v941_v4 }
 0x531   : > { %v943_v6 = vmul.f32 1.442695, %v942_v5 }
 0x532   : > { %v450_v7 = vpop.xlane.xlu0 %449 }
 0x533   : > { %1372 = vpow2.f32 %v943_v6 }
 0x534   : > { %1374 = vrcp.f32 %v450_v7 }
 0x539   : > { %v1371_v8 = vpop.eup %1370 }
 0x53a   : > { %v778_v9 = vsel %vm441_vm3, %v1371_v8, 0.0 }
 0x53b   : > { %779 = vadd.xlane.f32.xlu1 %v778_v9 }
 0x53d   : > { %v1373_v10 = vpop.eup %1372 }
 0x53e   : > { %v1375_v11 = vpop.eup %1374  ;;  %v945_v12 = vsel %vm441_vm3, %v1373_v10, 0.0 }
 0x53f   : > { %v452_v13 = vmul.f32 %v1375_v11, %v1369_v62  ;;  %946 = vadd.xlane.f32.xlu0 %v945_v12 }
 0x541   : > { %1259 = vmatmul.mubr.msk.f32.vlgmr.msra.gmra.mrb[4].mxu1 %vm441_vm3, %v452_v13 }
 0x542   : > { %1268 = vmatprep.mubr.msk.f32.mxu1 %vm1547_vm1, %v1546_v0 }
 0x54c   : > { %783 = vrot.lane.b32.xlu1 %v1759_v26, %s1549_s6  ;;  %s1051_s6 = scalar_lea.sflag [#allocation4], %s1725_s16 }
 0x550   : > { %1027 = vrot.lane.b32.xlu1 %v542_v45, %s1555_s29 }
 0x555   : > { %950 = vrot.lane.b32.xlu0 %v1759_v26, %s1551_s15  ;;  %s1557_s15 = smov [#allocation7]  }
 0x556   : > { %s1442_s11 = sshll.u32 %s1557_s15, 4  ;;  %s1443_s11 = int_to_ptr.vmem [resolvable:$false] %s1442_s11 }
 0x557   : > { %s1444_s12 = scalar_lea.vmem %s1443_s11, 256  ;;  %p1445_p10 = scmp.lt.s32.totalorder %s1812_s27, %s1443_s11 }
 0x558   : > { %p1446_p13 = scmp.lt.s32.totalorder %s1444_s12, %s1438_s7 }
 0x55a   : > { %p1447_p3 = por %p1446_p13, %p1445_p10 }
 0x55c   : > { %p1448_p7 = pnand %p1447_p3, %p1441_p8 }
 0x5c8   : > { %v780_v14 = vpop.xlane.xlu1 %779 }
 0x5c9   : > { %1376 = vrcp.f32 %v780_v14 }
 0x5cc   : > { %v947_v15 = vpop.xlane.xlu0 %946  ;;  %v784_v16 = vpop.permute.xlu1 %783 }
 0x5cd   : > { %1378 = vrcp.f32 %v947_v15  ;;  %1267 = vmatpush3.msra.mxu1 %v784_v16 }
 0x5ce   : > { %1276 = vmatprep.subr.mxu1 %v1546_v0 }
 0x5d0   : > { %v951_v19 = vpop.permute.xlu0 %950  ;;  %v1028_v25 = vpop.permute.xlu1 %1027 }
 0x5d1   : > { %v1036_v27 = vsel %vm441_vm3, %v452_v13, %v1028_v25 }
 0x5d3   : > { %v1377_v17 = vpop.eup %1376 }
 0x5d4   : > { %v782_v18 = vmul.f32 %v1377_v17, %v1371_v8 }
 0x5d6   : > { %1030 = vrot.lane.b32.xlu1 %v782_v18, %s1554_s10  ;;  %1269 = vmatmul.mubr.msk.f32.vlgmr.msra.gmra.mrb[6].mxu1 %vm441_vm3, %v782_v18 }
 0x5d7   : > { %v1379_v20 = vpop.eup %1378  ;;  %1277 = vmatpush3.msra.mxu1 %v951_v19  ;;  %1278 = vmatprep.mubr.msk.f32.mxu1 %vm1547_vm1, %v1546_v0 }
 0x5d8   : > { %v949_v21 = vmul.f32 %v1379_v20, %v1373_v10 }
 0x5da   : > { %1033 = vrot.lane.b32.xlu0 %v949_v21, %s1556_s13  ;;  %1279 = vmatmul.mubr.msk.f32.vlgmr.msra.gmra.mrb[8].mxu1 %vm441_vm3, %v949_v21 }
 0x614   : > { %v689_v22 = vpop.f32.mrb[4].mxu1 }
 0x615   : > { %v690_v23 = vadd.f32 %v689_v22, %v616_v52  ;;  %v1260_v24 = vpop.f32.mrb[5].mxu1 }
 0x648   : > { %v1031_v26 = vpop.permute.xlu1 %1030 }
 0x649   : > { %v1037_v0 = vsel %vm365_vm2, %v1036_v27, %v1031_v26 }
 0x64c   : > { %v1034_v28 = vpop.permute.xlu0 %1033 }
 0x64d   : > { %v1039_v29 = vsel %vm1038_vm4, %v1037_v0, %v1034_v28 }
 0x64e   : > { %1040 = vst.msk [vmem:[%s258_s23] sm:$0xff] %vm287_vm0, %v1039_v29 }
 0x64f   : > { %1451 = shalt.err (!%p1448_p7)
}
 0x650   : > { %s1452_s10 = scalar_lea.hbm %s1810_s14, 128  ;;  %s1456_s23 = scalar_lea.hbm %s1895_s4, 256 }
 0x651   : > { %p1453_p9 = scmp.ne.s32.totalorder %s1810_s14, %s1452_s10  ;;  %p1457_p0 = scmp.lt.u32.totalorder %s1810_s14, %s1895_s4 }
 0x652   : > { %p1458_p11 = scmp.lt.u32.totalorder %s1456_s23, %s1452_s10  ;;  %p1460_p4 = scmp.lt.u32.totalorder %s1452_s10, %s1810_s14 }
 0x653   : > { %p1454_p2 = pnand %p1453_p9, %p1680_p12 }
 0x654   : > { %p1459_p1 = por %p1458_p11, %p1457_p0 }
 0x655   : > { %p1455_p5 = pneg %p1454_p2 }
 0x656   : > { %p1461_p6 = por %p1460_p4, %p1459_p1 }
 0x658   : > { %p1462_p8 = pnand %p1461_p6, %p1455_p5 }
 0x65a   : > { %1465 = shalt.err (!%p1462_p8)
}
 0x65b   : > { %1295 = dma.vmem_to_hbm [thread:$0]  (%p1680_p12), %s1812_s27, 128, %s1810_s14, %s1051_s6   ;;  %v1218_v34 = vld [vmem:[%s1894_s3] ss:$0 sm:$0xff] }
 0x65c   : > { %s265_s11 = scalar_lea.vmem [#allocation8], %s1728_s17  ;;  %s1846_s13 = scalar_lea.hbm %s1896_s5, %s1221_s28 }
 0x65d   : > { %s1082_s12 = sshll.u32 %s265_s11, 4  ;;  %s1056_s27 = scalar_lea.sflag [#allocation9], %s1725_s16  ;;  %s1848_s12 = int_to_ptr.vmem [resolvable:$true] %s1082_s12 }
 0x65e   : > { %s1466_s14 = scalar_lea.vmem %s1848_s12, 128  ;;  %s1558_s17 = smov [#allocation8]  }
 0x65f   : > { %p1467_p10 = scmp.ne.s32.totalorder %s1848_s12, %s1466_s14  ;;  %s1470_s22 = sshll.u32 %s1558_s17, 4  ;;  %s1471_s22 = int_to_ptr.vmem [resolvable:$false] %s1470_s22 }
 0x660   : > { %s1472_s6 = scalar_lea.vmem %s1471_s22, 256  ;;  %p1473_p7 = scmp.lt.s32.totalorder %s1848_s12, %s1471_s22 }
 0x661   : > { %p1468_p13 = pnand %p1467_p10, %p1680_p12  ;;  %p1474_p9 = scmp.lt.s32.totalorder %s1472_s6, %s1466_s14 }
 0x663   : > { %p1469_p3 = pneg %p1468_p13  ;;  %p1475_p2 = por %p1474_p9, %p1473_p7 }
 0x665   : > { %p1476_p5 = pnand %p1475_p2, %p1469_p3 }
 0x6a9   : > { %v855_v30 = vpop.f32.mrb[6].mxu1 }
 0x6aa   : > { %v859_v31 = vadd.f32 %v855_v30, %v690_v23  ;;  %v1270_v32 = vpop.f32.mrb[7].mxu1 }
 0x6ad   : > { %v1022_v33 = vpop.f32.mrb[8].mxu1 }
 0x6ae   : > { %v1026_v35 = vadd.f32 %v1022_v33, %v859_v31  ;;  %v1280_v36 = vpop.f32.mrb[9].mxu1 }
 0x6b0   : > { %v1048_v37 = vadd.f32 %v1218_v34, %v1026_v35 }
 0x6b2   : > { %1049 = vst.msk [vmem:[%s265_s11] sm:$0xff] %vm287_vm0, %v1048_v37 }
 0x6b3   : > { %1479 = shalt.err (!%p1476_p5)
}
 0x6b4   : > { %s1480_s16 = scalar_lea.hbm %s1846_s13, 128  ;;  %s1484_s24 = scalar_lea.hbm %s1896_s5, 256 }
 0x6b5   : > { %p1481_p0 = scmp.ne.s32.totalorder %s1846_s13, %s1480_s16  ;;  %p1485_p4 = scmp.lt.u32.totalorder %s1846_s13, %s1896_s5 }
 0x6b6   : > { %p1486_p6 = scmp.lt.u32.totalorder %s1484_s24, %s1480_s16  ;;  %p1488_p10 = scmp.lt.u32.totalorder %s1480_s16, %s1846_s13 }
 0x6b7   : > { %p1482_p11 = pnand %p1481_p0, %p1680_p12 }
 0x6b8   : > { %p1487_p8 = por %p1486_p6, %p1485_p4 }
 0x6b9   : > { %p1483_p1 = pneg %p1482_p11 }
 0x6ba   : > { %p1489_p13 = por %p1488_p10, %p1487_p8 }
 0x6bc   : > { %p1490_p3 = pnand %p1489_p13, %p1483_p1 }
 0x6be   : > { %1493 = shalt.err (!%p1490_p3)
}
 0x6bf   : > { %1296 = dma.vmem_to_hbm [thread:$0]  (%p1680_p12), %s1848_s12, 128, %s1846_s13, %s1056_s27  }
 0x6c0 PF: > { %s1094_s15 = sand.u32 1, %s1528_s18   ;;  %p1911_p7 = scmp.ne.s32.totalorder %s1901_s25, 0 }
 0x6c1   : > { %p1912_p9 = scmp.ge.s32.totalorder %s1540_s21, 2  ;;  %s1095_s11 = scalar_lea.sflag [#allocation4], %s1094_s15 }
 0x6c3   : > { %p1308_p2 = pnand %p1912_p9, %p1911_p7 }
 0x6c5   : > { %1519 = dma.done.wait (!%p1308_p2), %s1095_s11, 128  }
 0x6c6   : > { %1521 = vsyncadd (!%p1308_p2), %s1095_s11, 4294967168  ;;  %s1104_s10 = scalar_lea.sflag [#allocation9], %s1094_s15 }
 0x6c7   : > { %1523 = dma.done.wait (!%p1308_p2), %s1104_s10, 128  }
 0x6c8   : > { %1525 = vsyncadd (!%p1308_p2), %s1104_s10, 4294967168  ;;  %p23_p12 = scmp.ge.s32.totalorder %s1645_s30, 4   ;;  %s1913_s18 = smov %s1532_s19 }
 0x6c9   : > { %s1914_s19 = smov %s1536_s20  ;;  %s1915_s20 = smov %s1676_s8 }
 0x6ca   : > { %s1916_s21 = smov %s1645_s30  ;;  %25 = sbr.rel (!%p23_p12) target bundleno = 8 (0x8), region = 102 }
 0x6d1   :  { %1109 = vsyncpa [#allocation3], 1 }
 0x6d2   :  { %1111 = vsyncpa [#allocation3 + $0x1], 1 }
 0x6d3   :  { %1112 = vsyncpa [#allocation6], 1 }
 0x6d4   :  { %1113 = vsyncpa [#allocation4], 1 }
 0x6d5   :  { %1115 = vsyncpa [#allocation4 + $0x1], 1 }
 0x6d6   :  { %1116 = vsyncpa [#allocation9], 1 }
 0x6d7   :  { %1118 = vsyncpa [#allocation9 + $0x1], 1 }

</bundles_post_ra>
